<compile_context>
chip_gen: v6e
topology: v6e:2x2x1
jax: 0.10.0
libtpu: 0.0.40
codegen_flags: <defaults>
</compile_context>

<pallas_src>
import functools

import jax
import jax.numpy as jnp
from jax import lax
from jax.experimental import pallas as pl
from jax.experimental.pallas import tpu as pltpu

BN_EPS = 1e-5
LEAKY_SLOPE = 0.01   # F.leaky_relu default negative_slope
LANE = 128


def _round_up(x, m):
    return (x + m - 1) // m * m


def _subnet_kernel(x_ref, w_ref, gamma_ref, beta_ref, rbits_ref, o_ref, *,
                   activation, dropout_p, keep_threshold):
    # ---- Linear: y = x @ W  (MXU).  Bias is omitted: exactly cancelled by the
    # training-mode BatchNorm mean subtraction below. ----
    y = jnp.dot(x_ref[...], w_ref[...],
                preferred_element_type=jnp.float32)            # (B, TN) f32

    # ---- BatchNorm1d (training mode, biased batch stats), single pass ----
    inv_n = 1.0 / y.shape[0]
    s = jnp.sum(y, axis=0, keepdims=True)                      # (1, TN)
    sq = jnp.sum(y * y, axis=0, keepdims=True)                 # (1, TN)
    mean = s * inv_n
    var = jnp.maximum(sq * inv_n - mean * mean, 0.0)           # biased variance
    y = (y - mean) * lax.rsqrt(var + BN_EPS)
    y = y * gamma_ref[...] + beta_ref[...]

    # ---- activation ----
    if activation == "relu":
        y = jnp.maximum(y, 0.0)
    elif activation == "leaky_relu":
        y = jnp.where(y >= 0.0, y, LEAKY_SLOPE * y)
    elif activation == "tanh":
        y = jnp.tanh(y)
    else:
        raise ValueError(f"unknown activation {activation!r}")

    # ---- dropout (training mode, inverted scaling) ----
    # Integer-domain keep test on precomputed uint32 bits: keep iff
    # bits >= round(p * 2^32)  =>  P(keep) = 1 - p.
    if dropout_p > 0.0:
        keep = rbits_ref[...] >= jnp.uint32(keep_threshold)
        y = jnp.where(keep, y * (1.0 / (1.0 - dropout_p)), 0.0)

    o_ref[...] = y.astype(o_ref.dtype)


def subnet_forward(x, params, *, activation="relu", dropout_p=0.0, seed=0,
                   tn=LANE, compute_dtype=jnp.float32):
    """x: (B, in_size).  params: W (out,in), b (present but has no effect: it is
    cancelled by training-mode BN), gamma (out,), beta (out,)."""
    assert tn % LANE == 0
    B, in_size = x.shape
    out_size = params["W"].shape[0]

    in_p = _round_up(in_size, LANE)
    out_p = _round_up(out_size, tn)

    # Zero-pad to lane-dense tiles.  Padded feature columns stay exactly zero
    # through Linear -> BN -> activation -> dropout and are sliced off at the end.
    x_p = jnp.zeros((B, in_p), compute_dtype).at[:, :in_size].set(
        x.astype(compute_dtype))
    w_t = jnp.zeros((in_p, out_p), compute_dtype).at[:in_size, :out_size].set(
        params["W"].T.astype(compute_dtype))
    gamma = jnp.ones((1, out_p), jnp.float32).at[0, :out_size].set(
        params["gamma"].astype(jnp.float32))
    beta = jnp.zeros((1, out_p), jnp.float32).at[0, :out_size].set(
        params["beta"].astype(jnp.float32))

    if dropout_p > 0.0:
        rbits = jax.random.bits(jax.random.PRNGKey(seed), (B, out_p), jnp.uint32)
        keep_threshold = min(int(round(float(dropout_p) * float(1 << 32))),
                             (1 << 32) - 1)
    else:
        rbits = jnp.zeros((B, out_p), jnp.uint32)
        keep_threshold = 0

    kernel = functools.partial(_subnet_kernel,
                               activation=activation,
                               dropout_p=float(dropout_p),
                               keep_threshold=keep_threshold)

    grid = (out_p // tn,)   # independent per-feature-tile work (BN is per-feature)
    out_full = pl.pallas_call(
        kernel,
        out_shape=jax.ShapeDtypeStruct((B, out_p), jnp.float32),
        grid=grid,
        in_specs=[
            pl.BlockSpec((B, in_p), lambda j: (0, 0)),    # x: resident across tiles
            pl.BlockSpec((in_p, tn), lambda j: (0, j)),   # W^T feature tile
            pl.BlockSpec((1, tn), lambda j: (0, j)),      # gamma tile
            pl.BlockSpec((1, tn), lambda j: (0, j)),      # beta tile
            pl.BlockSpec((B, tn), lambda j: (0, j)),      # dropout bits tile
        ],
        out_specs=pl.BlockSpec((B, tn), lambda j: (0, j)),
        compiler_params=pltpu.CompilerParams(
            dimension_semantics=("parallel",)),           # v7x: shard feature tiles
    )(x_p, w_t, gamma, beta, rbits)

    return out_full[:, :out_size]


def _reference_no_dropout(x, params, activation):
    """Pure-JAX reference of Linear(+bias) + BatchNorm1d(train) + activation."""
    y = x @ params["W"].T + params["b"]
    mean = jnp.mean(y, axis=0, keepdims=True)
    var = jnp.mean((y - mean) ** 2, axis=0, keepdims=True)
    y = (y - mean) / jnp.sqrt(var + BN_EPS)
    y = y * params["gamma"] + params["beta"]
    if activation == "relu":
        y = jnp.maximum(y, 0.0)
    elif activation == "leaky_relu":
        y = jnp.where(y >= 0.0, y, LEAKY_SLOPE * y)
    else:
        y = jnp.tanh(y)
    return y


if __name__ == "__main__":
    # SubNet(in_size=32, out_size=16, dropout=0.3, activation='relu')
    B, in_size, out_size = 8, 32, 16
    dropout_p = 0.3
    activation = "relu"

    key = jax.random.PRNGKey(0)
    kx, kw, kb = jax.random.split(key, 3)

    x = jax.random.normal(kx, (B, in_size), dtype=jnp.float32)

    # nn.Linear init: U(-1/sqrt(in), 1/sqrt(in)); nn.BatchNorm1d: gamma=1, beta=0
    bound = 1.0 / (in_size ** 0.5)
    params = {
        "W": jax.random.uniform(kw, (out_size, in_size), jnp.float32, -bound, bound),
        "b": jax.random.uniform(kb, (out_size,), jnp.float32, -bound, bound),
        "gamma": jnp.ones((out_size,), jnp.float32),
        "beta": jnp.zeros((out_size,), jnp.float32),
    }

    # Deterministic part (dropout disabled) checked against a pure-JAX reference
    # that *includes* the bias -- BN's batch-mean subtraction cancels it exactly.
    out_nodrop = subnet_forward(x, params, activation=activation, dropout_p=0.0)
    ref = _reference_no_dropout(x, params, activation)
    assert out_nodrop.shape == (B, out_size)
    assert jnp.allclose(out_nodrop, ref, atol=1e-5, rtol=1e-5), "mismatch vs reference"

    # Full forward with training-mode dropout (deterministic given `seed`).
    out = subnet_forward(x, params, activation=activation,
                         dropout_p=dropout_p, seed=1234)
    jax.block_until_ready(out)
    assert out.shape == (B, out_size)
    print("KERNEL_OK")
</pallas_src>

<mosaic_0001>
module attributes {stable_mosaic.version = 11 : i64} {
  func.func @_subnet_kernel(%arg0: i32, %arg1: memref<8x128xf32, #tpu.memory_space<vmem>>, %arg2: memref<128x128xf32, #tpu.memory_space<vmem>>, %arg3: memref<1x128xf32, #tpu.memory_space<vmem>>, %arg4: memref<1x128xf32, #tpu.memory_space<vmem>>, %arg5: memref<8x128xi32, #tpu.memory_space<vmem>>, %arg6: memref<8x128xf32, #tpu.memory_space<vmem>>) attributes {dimension_semantics = [#tpu.dimension_semantics<parallel>], iteration_bounds = array<i64: 1>, scalar_prefetch = 0 : i64, scratch_operands = 0 : i64, tpu.core_type = #tpu.core_type<tc>, window_params = [{pipeline_mode = #tpu.pipeline_mode<synchronous>, transform_indices = @transform_0, window_bounds = array<i64: 8, 128>}, {transform_indices = @transform_1, window_bounds = array<i64: 128, 128>}, {transform_indices = @transform_2, window_bounds = array<i64: 1, 128>}, {transform_indices = @transform_3, window_bounds = array<i64: 1, 128>}, {transform_indices = @transform_4, window_bounds = array<i64: 8, 128>}, {transform_indices = @transform_5, window_bounds = array<i64: 8, 128>}]} {
    %c0 = arith.constant 0 : index
    %c0_0 = arith.constant 0 : index
    %0 = vector.load %arg1[%c0, %c0_0] : memref<8x128xf32, #tpu.memory_space<vmem>>, vector<8x128xf32>
    %c0_1 = arith.constant 0 : index
    %c0_2 = arith.constant 0 : index
    %1 = vector.load %arg2[%c0_1, %c0_2] : memref<128x128xf32, #tpu.memory_space<vmem>>, vector<128x128xf32>
    %cst = arith.constant dense<0.000000e+00> : vector<8x128xf32>
    %2 = tpu.matmul %0, %1, %cst {dimension_numbers = #tpu.dot_dimension_numbers<[1], [0], [0], [1], [0, 0, 1, 1], [], []>} : vector<8x128xf32>, vector<128x128xf32>, vector<8x128xf32> -> vector<8x128xf32>
    %cst_3 = arith.constant dense<0.000000e+00> : vector<128xf32>
    %3 = vector.multi_reduction <add>, %2, %cst_3 [0] : vector<8x128xf32> to vector<128xf32>
    %4 = vector.shape_cast %3 : vector<128xf32> to vector<1x128xf32>
    %5 = arith.mulf %2, %2 : vector<8x128xf32>
    %cst_4 = arith.constant dense<0.000000e+00> : vector<128xf32>
    %6 = vector.multi_reduction <add>, %5, %cst_4 [0] : vector<8x128xf32> to vector<128xf32>
    %7 = vector.shape_cast %6 : vector<128xf32> to vector<1x128xf32>
    %cst_5 = arith.constant 1.250000e-01 : f32
    %8 = vector.broadcast %cst_5 : f32 to vector<1x128xf32>
    %9 = arith.mulf %4, %8 : vector<1x128xf32>
    %cst_6 = arith.constant 1.250000e-01 : f32
    %10 = vector.broadcast %cst_6 : f32 to vector<1x128xf32>
    %11 = arith.mulf %7, %10 : vector<1x128xf32>
    %12 = arith.mulf %9, %9 : vector<1x128xf32>
    %13 = arith.subf %11, %12 : vector<1x128xf32>
    %cst_7 = arith.constant 0.000000e+00 : f32
    %14 = vector.broadcast %cst_7 : f32 to vector<1x128xf32>
    %15 = arith.maximumf %13, %14 : vector<1x128xf32>
    %16 = vector.broadcast %9 : vector<1x128xf32> to vector<8x128xf32>
    %17 = arith.subf %2, %16 : vector<8x128xf32>
    %cst_8 = arith.constant 9.99999974E-6 : f32
    %18 = vector.broadcast %cst_8 : f32 to vector<1x128xf32>
    %19 = arith.addf %15, %18 : vector<1x128xf32>
    %20 = math.rsqrt %19 : vector<1x128xf32>
    %21 = vector.broadcast %20 : vector<1x128xf32> to vector<8x128xf32>
    %22 = arith.mulf %17, %21 : vector<8x128xf32>
    %c0_9 = arith.constant 0 : index
    %c0_10 = arith.constant 0 : index
    %23 = vector.load %arg3[%c0_9, %c0_10] : memref<1x128xf32, #tpu.memory_space<vmem>>, vector<1x128xf32>
    %24 = vector.broadcast %23 : vector<1x128xf32> to vector<8x128xf32>
    %25 = arith.mulf %22, %24 : vector<8x128xf32>
    %c0_11 = arith.constant 0 : index
    %c0_12 = arith.constant 0 : index
    %26 = vector.load %arg4[%c0_11, %c0_12] : memref<1x128xf32, #tpu.memory_space<vmem>>, vector<1x128xf32>
    %27 = vector.broadcast %26 : vector<1x128xf32> to vector<8x128xf32>
    %28 = arith.addf %25, %27 : vector<8x128xf32>
    %cst_13 = arith.constant 0.000000e+00 : f32
    %29 = vector.broadcast %cst_13 : f32 to vector<8x128xf32>
    %30 = arith.maximumf %28, %29 : vector<8x128xf32>
    %c0_14 = arith.constant 0 : index
    %c0_15 = arith.constant 0 : index
    %31 = vector.load %arg6[%c0_14, %c0_15] : memref<8x128xf32, #tpu.memory_space<vmem>>, vector<8x128xf32>
    tpu.vector_store %arg6[%c0_14, %c0_15], %30 {strides = array<i32>} : memref<8x128xf32, #tpu.memory_space<vmem>>, vector<8x128xf32>,
    return
  }
  func.func @transform_0(%arg0: i32) -> (i32, i32) {
    %c0_i32 = arith.constant 0 : i32
    %c0_i32_0 = arith.constant 0 : i32
    %c0_i32_1 = arith.constant 0 : i32
    return %c0_i32, %c0_i32_0 : i32, i32
  }
  func.func @transform_1(%arg0: i32) -> (i32, i32) {
    %c0_i32 = arith.constant 0 : i32
    %c0_i32_0 = arith.constant 0 : i32
    return %c0_i32, %arg0 : i32, i32
  }
  func.func @transform_2(%arg0: i32) -> (i32, i32) {
    %c0_i32 = arith.constant 0 : i32
    %c0_i32_0 = arith.constant 0 : i32
    return %c0_i32, %arg0 : i32, i32
  }
  func.func @transform_3(%arg0: i32) -> (i32, i32) {
    %c0_i32 = arith.constant 0 : i32
    %c0_i32_0 = arith.constant 0 : i32
    return %c0_i32, %arg0 : i32, i32
  }
  func.func @transform_4(%arg0: i32) -> (i32, i32) {
    %c0_i32 = arith.constant 0 : i32
    %c0_i32_0 = arith.constant 0 : i32
    return %c0_i32, %arg0 : i32, i32
  }
  func.func @transform_5(%arg0: i32) -> (i32, i32) {
    %c0_i32 = arith.constant 0 : i32
    %c0_i32_0 = arith.constant 0 : i32
    return %c0_i32, %arg0 : i32, i32
  }
}

</mosaic_0001>

<bundles_post_ra>
// kernel: tpu_custom_call.1
= control target key start
LH: loop header
LB: loop body
LE: loop exit
PB: predicated region body
PF: predicated region fallthrough
CT: control target
= control target key end

     0   :  { %10 = vsyncpa [#allocation3], 0  ;;  %s407_s0 = inlined_call_operand.hbm [shape: f32[8,128], index: 0, kind: input, shape index: {}]   ;;  %s408_s1 = inlined_call_operand.hbm [shape: f32[128,128], index: 1, kind: input, shape index: {}]   ;;  %s409_s2 = inlined_call_operand.vmem [shape: f32[1,128], index: 2, kind: input, shape index: {}]   ;;  %s410_s3 = inlined_call_operand.vmem [shape: f32[1,128], index: 3, kind: input, shape index: {}]   ;;  %s411_s4 = inlined_call_operand.hbm [shape: u32[8,128], index: 4, kind: input, shape index: {}]   ;;  %s412_s5 = inlined_call_operand.hbm [shape: f32[8,128], index: 5, kind: output, shape index: {}]  }
   0x1   :  { %11 = vsyncpa [#allocation6], 0 }
   0x2   :  { %12 = vsyncpa [#allocation4], 0  ;;  %s351_s18 = smov [#allocation5]  }
   0x3   :  { %s28_s19 = sshll.u32 %s351_s18, 4  ;;  %s29_s19 = int_to_ptr.vmem [resolvable:$true] %s28_s19 }
   0x4   :  { %s273_s20 = scalar_lea.vmem %s29_s19, 2048  ;;  %p278_p1 = scmp.lt.s32.totalorder %s29_s19, %s29_s19 }
   0x5   :  { %p274_p0 = scmp.ne.s32.totalorder %s29_s19, %s273_s20  ;;  %p279_p2 = scmp.lt.s32.totalorder %s273_s20, %s273_s20 }
   0x7   :  { %p280_p3 = por %p279_p2, %p278_p1 }
   0x9   :  { %p281_p4 = pnand %p280_p3, %p274_p0 }
   0xb   :  { %284 = shalt.err (!%p281_p4)
}
   0xc   :  { %s352_s21 = smov 128   ;;  %s353_s22 = smov 8  }
   0xd   :  { %34 = dma.hbm_to_vmem [thread:$0]  %s408_s1, 2048, %s29_s19, [#allocation6], %s352_s21, %s352_s21, %s353_s22  }
   0xe   :  { %s354_s25 = smov [#allocation2]   ;;  %s355_s27 = smov [#allocation7]  }
   0xf   :  { %s19_s26 = sshll.u32 %s354_s25, 4  ;;  %s45_s28 = sshll.u32 %s355_s27, 4  ;;  %s20_s26 = int_to_ptr.vmem [resolvable:$true] %s19_s26  ;;  %s46_s28 = int_to_ptr.vmem [resolvable:$true] %s45_s28 }
  0x10   :  { %s293_s29 = scalar_lea.vmem %s20_s26, 128  ;;  %p298_p6 = scmp.lt.s32.totalorder %s20_s26, %s20_s26 }
  0x11   :  { %p294_p5 = scmp.ne.s32.totalorder %s20_s26, %s293_s29  ;;  %p299_p7 = scmp.lt.s32.totalorder %s293_s29, %s293_s29 }
  0x13   :  { %p300_p8 = por %p299_p7, %p298_p6 }
  0x15   :  { %p301_p9 = pnand %p300_p8, %p294_p5 }
  0x17   :  { %304 = shalt.err (!%p301_p9)
}
  0x18   :  { %22 = dma.hbm_to_vmem [thread:$0]  %s407_s0, 128, %s20_s26, [#allocation3]  }
  0x19   :  { %s313_s7 = scalar_lea.vmem %s46_s28, 128  ;;  %p318_p11 = scmp.lt.s32.totalorder %s46_s28, %s46_s28 }
  0x1a   :  { %p314_p10 = scmp.ne.s32.totalorder %s46_s28, %s313_s7  ;;  %p319_p12 = scmp.lt.s32.totalorder %s313_s7, %s313_s7 }
  0x1c   :  { %p320_p13 = por %p319_p12, %p318_p11 }
  0x1e   :  { %p321_p0 = pnand %p320_p13, %p314_p10 }
  0x20   :  { %324 = shalt.err (!%p321_p0)
}
  0x21   :  { %48 = dma.hbm_to_vmem [thread:$0]  %s411_s4, 128, %s46_s28, [#allocation6]  }
  0x22   :  { %345 = dma.done.wait [#allocation3], 128  }
  0x23   :  { %346 = vsyncadd [#allocation3], 4294967168 }
  0x24   :  { %347 = dma.done.wait [#allocation6], 2176  }
  0x25   :  { %348 = vsyncadd [#allocation6], 4294965120  ;;  %v356_v0 = vmov 0.0   ;;  %vm357_vm0 = vmmov 0   ;;  %v74_v1 = vld [vmem:[#allocation5 + $0x78] sm:$0xff]  ;;  %v73_v2 = vld [vmem:[#allocation5 + $0x70] sm:$0xff] }
  0x26   :  { %220 = vmatprep.subr.mxu0 %v356_v0  ;;  %252 = vmatprep.mubr.msk.f32.mxu0 %vm357_vm0, %v356_v0  ;;  %v72_v3 = vld [vmem:[#allocation5 + $0x68] sm:$0xff]  ;;  %v71_v4 = vld [vmem:[#allocation5 + $0x60] sm:$0xff]  ;;  %v70_v5 = vld [vmem:[#allocation5 + $0x58] sm:$0xff]  ;;  %s358_s11 = smov [#allocation8]  }
  0x27   :  { %221 = vmatpush3.msra.mxu0 %v74_v1  ;;  %v69_v6 = vld [vmem:[#allocation5 + $0x50] sm:$0xff]  ;;  %v68_v7 = vld [vmem:[#allocation5 + $0x48] sm:$0xff]  ;;  %v67_v8 = vld [vmem:[#allocation5 + $0x40] sm:$0xff]  ;;  %s191_s12 = sshll.u32 %s358_s11, 4  ;;  %s192_s12 = int_to_ptr.vmem [resolvable:$true] %s191_s12 }
  0x28   :  { %222 = vmatprep.subr.mxu0 %v356_v0  ;;  %v66_v9 = vld [vmem:[#allocation5 + $0x38] sm:$0xff]  ;;  %v65_v10 = vld [vmem:[#allocation5 + $0x30] sm:$0xff]  ;;  %v64_v11 = vld [vmem:[#allocation5 + $0x28] sm:$0xff]  ;;  %s325_s13 = scalar_lea.vmem %s192_s12, 128  ;;  %p330_p2 = scmp.lt.s32.totalorder %s192_s12, %s192_s12 }
  0x29   :  { %223 = vmatpush3.msra.mxu0 %v73_v2  ;;  %v63_v12 = vld [vmem:[#allocation5 + $0x20] sm:$0xff]  ;;  %v62_v13 = vld [vmem:[#allocation5 + $0x18] sm:$0xff]  ;;  %v61_v14 = vld [vmem:[#allocation5 + $0x10] sm:$0xff]  ;;  %p326_p1 = scmp.ne.s32.totalorder %s192_s12, %s325_s13  ;;  %p331_p3 = scmp.lt.s32.totalorder %s325_s13, %s325_s13 }
  0x2a   :  { %224 = vmatprep.subr.mxu0 %v356_v0  ;;  %v60_v15 = vld [vmem:[#allocation5 + $0x8] sm:$0xff]  ;;  %v59_v16 = vld [vmem:[#allocation5] sm:$0xff]  ;;  %v58_v17 = vld [vmem:[#allocation2] sm:$0xff] }
  0x2b   :  { %225 = vmatpush3.msra.mxu0 %v72_v3  ;;  %v201_v41 = vld [vmem:[%s409_s2] ss:$0 sm:$0xff]  ;;  %p332_p4 = por %p331_p3, %p330_p2 }
  0x2c   :  { %226 = vmatprep.subr.mxu0 %v356_v0  ;;  %v202_v43 = vld [vmem:[%s410_s3] ss:$0 sm:$0xff] }
  0x2d   :  { %227 = vmatpush3.msra.mxu0 %v71_v4  ;;  %p333_p5 = pnand %p332_p4, %p326_p1 }
  0x2e   :  { %228 = vmatprep.subr.mxu0 %v356_v0 }
  0x2f   :  { %229 = vmatpush3.msra.mxu0 %v70_v5 }
  0x30   :  { %230 = vmatprep.subr.mxu0 %v356_v0 }
  0x31   :  { %231 = vmatpush3.msra.mxu0 %v69_v6 }
  0x32   :  { %232 = vmatprep.subr.mxu0 %v356_v0 }
  0x33   :  { %233 = vmatpush3.msra.mxu0 %v68_v7 }
  0x34   :  { %234 = vmatprep.subr.mxu0 %v356_v0 }
  0x35   :  { %235 = vmatpush3.msra.mxu0 %v67_v8 }
  0x36   :  { %236 = vmatprep.subr.mxu0 %v356_v0 }
  0x37   :  { %237 = vmatpush3.msra.mxu0 %v66_v9 }
  0x38   :  { %238 = vmatprep.subr.mxu0 %v356_v0 }
  0x39   :  { %239 = vmatpush3.msra.mxu0 %v65_v10 }
  0x3a   :  { %240 = vmatprep.subr.mxu0 %v356_v0 }
  0x3b   :  { %241 = vmatpush3.msra.mxu0 %v64_v11 }
  0x3c   :  { %242 = vmatprep.subr.mxu0 %v356_v0 }
  0x3d   :  { %243 = vmatpush3.msra.mxu0 %v63_v12 }
  0x3e   :  { %244 = vmatprep.subr.mxu0 %v356_v0 }
  0x3f   :  { %245 = vmatpush3.msra.mxu0 %v62_v13 }
  0x40   :  { %246 = vmatprep.subr.mxu0 %v356_v0 }
  0x41   :  { %247 = vmatpush3.msra.mxu0 %v61_v14 }
  0x42   :  { %248 = vmatprep.subr.mxu0 %v356_v0 }
  0x43   :  { %249 = vmatpush3.msra.mxu0 %v60_v15 }
  0x44   :  { %250 = vmatprep.subr.mxu0 %v356_v0 }
  0x45   :  { %251 = vmatpush3.msra.mxu0 %v59_v16 }
  0x46   :  { %253 = vmatmul.mubr.f32.vlgmr.msra.gmra.mxu0 %v58_v17 }
 0x106   :  { %v141_v18 = vpop.f32.mrf.mxu0 }
 0x107   :  { %v145_v19 = vrot.slane %v141_v18, 4  ;;  %v151_v20 = vmul.f32 %v141_v18, %v141_v18 }
 0x108   :  { %v254_v21 = vpop.f32.mrf.mxu0 }
 0x109   :  { %v146_v22 = vadd.f32 %v145_v19, %v141_v18  ;;  %v152_v23 = vrot.slane %v151_v20, 4 }
 0x10b   :  { %v147_v24 = vrot.slane %v146_v22, 2  ;;  %v153_v25 = vadd.f32 %v152_v23, %v151_v20 }
 0x10d   :  { %v148_v26 = vadd.f32 %v147_v24, %v146_v22  ;;  %v154_v27 = vrot.slane %v153_v25, 2 }
 0x10f   :  { %v149_v28 = vrot.slane %v148_v26, 1  ;;  %v155_v29 = vadd.f32 %v154_v27, %v153_v25 }
 0x111   :  { %v150_v30 = vadd.f32 %v149_v28, %v148_v26  ;;  %v156_v31 = vrot.slane %v155_v29, 1 }
 0x113   :  { %v157_v32 = vadd.f32 %v156_v31, %v155_v29  ;;  %v158_v33 = vmul.f32 0.125, %v150_v30 }
 0x115   :  { %v159_v34 = vmul.f32 0.125, %v157_v32  ;;  %v160_v35 = vmul.f32 %v158_v33, %v158_v33  ;;  %v163_v39 = vsub.f32 %v141_v18, %v158_v33 }
 0x117   :  { %v161_v36 = vsub.f32 %v159_v34, %v160_v35 }
 0x119   :  { %v162_v37 = vmax.f32 %v161_v36, 0.0 }
 0x11b   :  { %v164_v38 = vadd.f32 1e-05, %v162_v37 }
 0x11d   :  { %263 = vrsqrt.f32 %v164_v38 }
 0x12a   :  { %v264_v40 = vpop.eup %263 }
 0x12b   :  { %v166_v42 = vmul.f32 %v264_v40, %v163_v39 }
 0x12d   :  { %v174_v44 = vmul.f32 %v201_v41, %v166_v42 }
 0x12f   :  { %v182_v45 = vadd.f32 %v202_v43, %v174_v44 }
 0x131   :  { %v183_v46 = vmax.f32 %v182_v45, 0.0 }
 0x133   :  { %184 = vst [vmem:[#allocation8] sm:$0xff] %v183_v46 }
 0x134   :  { %336 = shalt.err (!%p333_p5)
}
 0x135   :  { %194 = dma.vmem_to_hbm [thread:$0]  %s192_s12, 128, %s412_s5, [#allocation4]  }
 0x136   :  { %349 = dma.done.wait [#allocation4], 128  }
 0x137   :  { %350 = vsyncadd [#allocation4], 4294967168 }
 0x138   :  { %198 = vsyncpa [#allocation3], 1 }
 0x139   :  { %199 = vsyncpa [#allocation6], 1 }
 0x13a   :  { %200 = vsyncpa [#allocation4], 1 }

</bundles_post_ra>
